<compile_context>
chip_gen: v5e
topology: v5e:2x2
jax: 0.10.0
libtpu: 0.0.40
codegen_flags: <defaults>
</compile_context>

<pallas_src>
import functools

import jax
import jax.numpy as jnp
from jax.experimental import pallas as pl
from jax.experimental.pallas import tpu as pltpu


def _embedding_kernel(*refs, keep_threshold, keep_scale, apply_dropout):
    """One token block: one-hot-matmul gather, optional dropout, one store."""
    if apply_dropout:
        ids_ref, table_ref, bits_ref, out_ref = refs
    else:
        ids_ref, table_ref, out_ref = refs
        bits_ref = None

    ids = ids_ref[...]                          # (T, 1) int32
    t = ids.shape[0]
    vocab = table_ref.shape[0]

    # Vectorized gather on the MXU: (T, vocab) @ (vocab, dim) -> (T, dim).
    iota = jax.lax.broadcasted_iota(jnp.int32, (t, vocab), 1)
    one_hot = (iota == ids).astype(table_ref.dtype)
    gathered = jnp.dot(one_hot, table_ref[...],
                       preferred_element_type=jnp.float32)

    if apply_dropout:
        # Keep with probability (1 - p): raw uint32 compare, single scale mul.
        keep = bits_ref[...] >= jnp.uint32(keep_threshold)
        gathered = jnp.where(keep, gathered * jnp.float32(keep_scale),
                             jnp.float32(0.0))

    out_ref[...] = gathered.astype(out_ref.dtype)


def embedding_layer_forward(token_ids, table, *, dropout_rate=0.0,
                            training=False, rng_key=None,
                            tokens_per_block=256):
    """Forward pass of EmbeddingLayer (nn.Embedding followed by nn.Dropout).

    token_ids: int array, shape [sent_len] or [batch, sent_len]
    table:     float array, shape [vocab, embed_dim]
    returns:   float array, shape token_ids.shape + (embed_dim,)
    """
    orig_shape = token_ids.shape
    ids_flat = token_ids.reshape(-1).astype(jnp.int32)
    n = ids_flat.shape[0]
    vocab, dim = table.shape

    # Sublane-packing multiple for the dtype (8 f32 / 16 bf16 / 32 int8).
    itemsize = jnp.dtype(table.dtype).itemsize
    sub = max(8, 32 // max(1, itemsize))

    # Large blocks amortize per-step overhead; small inputs get a single block.
    tpb = min(tokens_per_block, pl.cdiv(n, sub) * sub)
    tpb = pl.cdiv(tpb, sub) * sub
    n_pad = pl.cdiv(n, tpb) * tpb
    if n_pad != n:
        ids_flat = jnp.pad(ids_flat, (0, n_pad - n))   # pad tokens gather row 0
    ids_2d = ids_flat.reshape(n_pad, 1)
    grid = (n_pad // tpb,)

    apply_dropout = bool(training) and float(dropout_rate) > 0.0
    keep_threshold = min(int(round(float(dropout_rate) * (2 ** 32))),
                         2 ** 32 - 1)
    keep_scale = (1.0 / (1.0 - float(dropout_rate))) if apply_dropout else 1.0

    in_specs = [
        pl.BlockSpec((tpb, 1), lambda i: (i, 0)),       # token-id block
        pl.BlockSpec((vocab, dim), lambda i: (0, 0)),   # VMEM-resident table
    ]
    args = [ids_2d, table]
    if apply_dropout:
        if rng_key is None:
            rng_key = jax.random.PRNGKey(0)
        bits = jax.random.bits(rng_key, (n_pad, dim), dtype=jnp.uint32)
        in_specs.append(pl.BlockSpec((tpb, dim), lambda i: (i, 0)))
        args.append(bits)

    kernel = functools.partial(
        _embedding_kernel,
        keep_threshold=keep_threshold,
        keep_scale=keep_scale,
        apply_dropout=apply_dropout,
    )

    out = pl.pallas_call(
        kernel,
        out_shape=jax.ShapeDtypeStruct((n_pad, dim), table.dtype),
        grid=grid,
        in_specs=in_specs,
        out_specs=pl.BlockSpec((tpb, dim), lambda i: (i, 0)),
        compiler_params=pltpu.CompilerParams(
            dimension_semantics=("parallel",),      # independent token blocks
            vmem_limit_bytes=64 * 1024 * 1024),     # headroom for bigger tables
    )(*args)

    if n_pad != n:
        out = out[:n]
    return out.reshape(orig_shape + (dim,))


if __name__ == "__main__":
    # Deterministic synthetic parameters / inputs.
    VOCAB = 32          # full_dict_size
    EMBED_DIM = 128     # input_dim (lane-dense)
    BATCH = 2
    SEQ = 8
    DROPOUT_RATE = 0.2  # identity in eval mode, as in nn.Dropout

    key = jax.random.PRNGKey(0)
    k_table, k_ids, k_drop = jax.random.split(key, 3)

    # nn.Embedding(full_dict_size, input_dim).weight ~ N(0, 1)
    table = jax.random.normal(k_table, (VOCAB, EMBED_DIM), dtype=jnp.float32)
    token_ids = jax.random.randint(k_ids, (BATCH, SEQ), 0, VOCAB,
                                   dtype=jnp.int32)

    # Pure-JAX reference for the embedding lookup.
    ref = jnp.take(table, token_ids.reshape(-1), axis=0).reshape(
        BATCH, SEQ, EMBED_DIM)

    # Eval-mode forward (dropout is identity) — exact check.
    out = embedding_layer_forward(token_ids, table,
                                  dropout_rate=DROPOUT_RATE, training=False)
    out = jax.block_until_ready(out)
    assert out.shape == (BATCH, SEQ, EMBED_DIM)
    assert jnp.allclose(out, ref, atol=1e-5, rtol=1e-5)

    # Non-batched input path.
    out_1d = embedding_layer_forward(token_ids[0], table,
                                     dropout_rate=DROPOUT_RATE, training=False)
    out_1d = jax.block_until_ready(out_1d)
    assert out_1d.shape == (SEQ, EMBED_DIM)
    assert jnp.allclose(out_1d, ref[0], atol=1e-5, rtol=1e-5)

    # Training mode: every element is either dropped (0) or scaled by 1/(1-p).
    out_train = embedding_layer_forward(token_ids, table,
                                        dropout_rate=DROPOUT_RATE,
                                        training=True, rng_key=k_drop)
    out_train = jax.block_until_ready(out_train)
    assert out_train.shape == (BATCH, SEQ, EMBED_DIM)
    assert bool(jnp.all(jnp.isfinite(out_train)))
    scale = 1.0 / (1.0 - DROPOUT_RATE)
    ok = (jnp.isclose(out_train, 0.0, atol=1e-6)
          | jnp.isclose(out_train, ref * scale, atol=1e-5, rtol=1e-5))
    assert bool(jnp.all(ok))

    print("KERNEL_OK")
</pallas_src>

<mosaic_0001>
module attributes {stable_mosaic.version = 11 : i64} {
  func.func @_embedding_kernel(%arg0: i32, %arg1: memref<16x1xi32, #tpu.memory_space<vmem>>, %arg2: memref<32x128xf32, #tpu.memory_space<vmem>>, %arg3: memref<16x128xf32, #tpu.memory_space<vmem>>) attributes {dimension_semantics = [#tpu.dimension_semantics<parallel>], iteration_bounds = array<i64: 1>, scalar_prefetch = 0 : i64, scratch_operands = 0 : i64, tpu.core_type = #tpu.core_type<tc>, window_params = [{transform_indices = @transform_0, window_bounds = array<i64: 16, 1>}, {pipeline_mode = #tpu.pipeline_mode<synchronous>, transform_indices = @transform_1, window_bounds = array<i64: 32, 128>}, {transform_indices = @transform_2, window_bounds = array<i64: 16, 128>}]} {
    %c0 = arith.constant 0 : index
    %c0_0 = arith.constant 0 : index
    %0 = vector.load %arg1[%c0, %c0_0] : memref<16x1xi32, #tpu.memory_space<vmem>>, vector<16x1xi32>
    %1 = tpu.iota {dimensions = array<i32: 1>} : vector<16x32xi32>
    %2 = vector.broadcast %0 : vector<16x1xi32> to vector<16x32xi32>
    %3 = arith.cmpi eq, %1, %2 : vector<16x32xi32>
    %4 = arith.extui %3 : vector<16x32xi1> to vector<16x32xi32>
    %5 = arith.sitofp %4 : vector<16x32xi32> to vector<16x32xf32>
    %c0_1 = arith.constant 0 : index
    %c0_2 = arith.constant 0 : index
    %6 = vector.load %arg2[%c0_1, %c0_2] : memref<32x128xf32, #tpu.memory_space<vmem>>, vector<32x128xf32>
    %cst = arith.constant dense<0.000000e+00> : vector<16x128xf32>
    %7 = tpu.matmul %5, %6, %cst {dimension_numbers = #tpu.dot_dimension_numbers<[1], [0], [0], [1], [0, 0, 1, 1], [], []>} : vector<16x32xf32>, vector<32x128xf32>, vector<16x128xf32> -> vector<16x128xf32>
    %c0_3 = arith.constant 0 : index
    %c0_4 = arith.constant 0 : index
    %8 = vector.load %arg3[%c0_3, %c0_4] : memref<16x128xf32, #tpu.memory_space<vmem>>, vector<16x128xf32>
    tpu.vector_store %arg3[%c0_3, %c0_4], %7 {strides = array<i32>} : memref<16x128xf32, #tpu.memory_space<vmem>>, vector<16x128xf32>,
    return
  }
  func.func @transform_0(%arg0: i32) -> (i32, i32) {
    %c0_i32 = arith.constant 0 : i32
    %c0_i32_0 = arith.constant 0 : i32
    return %arg0, %c0_i32 : i32, i32
  }
  func.func @transform_1(%arg0: i32) -> (i32, i32) {
    %c0_i32 = arith.constant 0 : i32
    %c0_i32_0 = arith.constant 0 : i32
    %c0_i32_1 = arith.constant 0 : i32
    return %c0_i32, %c0_i32_0 : i32, i32
  }
  func.func @transform_2(%arg0: i32) -> (i32, i32) {
    %c0_i32 = arith.constant 0 : i32
    %c0_i32_0 = arith.constant 0 : i32
    return %arg0, %c0_i32 : i32, i32
  }
}

</mosaic_0001>

<bundles_post_ra>
// kernel: tpu_custom_call.1
= control target key start
LH: loop header
LB: loop body
LE: loop exit
PB: predicated region body
PF: predicated region fallthrough
CT: control target
= control target key end

     0   :  { %7 = vsyncpa [#allocation3], 0  ;;  %s205_s0 = inlined_call_operand.vmem [shape: s32[16,1], index: 0, kind: input, shape index: {}]   ;;  %s206_s1 = inlined_call_operand.hbm [shape: f32[32,128], index: 1, kind: input, shape index: {}]   ;;  %s207_s2 = inlined_call_operand.hbm [shape: f32[16,128], index: 2, kind: output, shape index: {}]  }
   0x1   :  { %8 = vsyncpa [#allocation4], 0  ;;  %s15_s11 = sshll.u32 %s206_s1, 4  ;;  %s166_s12 = smov [#allocation2]   ;;  %s16_s11 = int_to_ptr.hbm [resolvable:$true] %s15_s11 }
   0x2   :  { %s17_s13 = sshll.u32 %s166_s12, 4  ;;  %s167_s14 = smov 128   ;;  %s18_s13 = int_to_ptr.vmem [resolvable:$true] %s17_s13 }
   0x3   :  { %s168_s15 = smov 8  }
   0x4   :  { %23 = dma.hbm_to_vmem [thread:$0]  %s16_s11, 512, %s18_s13, [#allocation3], %s167_s14, %s167_s14, %s168_s15  }
   0x5   :  { %162 = dma.done.wait [#allocation3], 512  }
   0x6   :  { %163 = vsyncadd [#allocation3], 4294966784  ;;  %v169_v0 = vmov 0   ;;  %v28_v1 = vld [vmem:[%s205_s0] sm:$0xff]  ;;  %v47_v2 = vld [vmem:[#allocation2 + $0x18] sm:$0xff]  ;;  %v30_v7 = vlaneseq  ;;  %vm48_vm0 = vcmask 261120  }
   0x7   :  { %113 = vset.pattern.permute.xlu0 %v169_v0  ;;  %67 = vmatpush.msra.mxu0 %v47_v2  ;;  %v46_v3 = vld [vmem:[#allocation2 + $0x10] sm:$0xff]  ;;  %v45_v4 = vld [vmem:[#allocation2 + $0x8] sm:$0xff]  ;;  %v44_v6 = vld [vmem:[#allocation2] sm:$0xff]  ;;  %v170_v10 = vmov 0.0   ;;  %s86_s22 = sshll.u32 %s207_s2, 4  ;;  %s87_s22 = int_to_ptr.hbm [resolvable:$true] %s86_s22 }
   0x8   :  { %33 = vperm.xlu0 %113, %v28_v1   ;;  %103 = vmatpush.msra.mxu1 %v47_v2  ;;  %v29_v5 = vld [vmem:[%s205_s0 + $0x8] sm:$0xff]  ;;  %v31_v8 = vand.u32 127, %v30_v7  ;;  %s171_s0 = smov [#allocation5]  }
   0x9   :  { %68 = vmatpush.msra.mxu0 %v46_v3  ;;  %s84_s19 = sshll.u32 %s171_s0, 4  ;;  %s85_s19 = int_to_ptr.vmem [resolvable:$true] %s84_s19 }
   0xa   :  { %104 = vmatpush.msra.mxu1 %v46_v3 }
   0xb   :  { %69 = vmatpush.msra.mxu0 %v45_v4 }
   0xc   :  { %105 = vmatpush.msra.mxu1 %v45_v4 }
   0xd   :  { %70 = vmatpush.msra.mxu0 %v44_v6 }
   0xe   :  { %106 = vmatpush.msra.mxu1 %v44_v6 }
  0x10   :  { %36 = vperm.xlu0 %113, %v29_v5  }
  0x7a   :  { %v34_v9 = vpop.permute.xlu0 %33 }
  0x7b   :  { %vm38_vm1 = vcmp.eq.s32.totalorder %v31_v8, %v34_v9 }
  0x7c   :  { %v99_v11 = vsel %vm38_vm1, 1.0, %v170_v10 }
  0x7d   :  { %101 = vmatmul.msk.f32.vlgmr.msra.gmra.mxu0 %vm48_vm0, %v99_v11 }
  0x82   :  { %v37_v12 = vpop.permute.xlu0 %36 }
  0x83   :  { %vm39_vm2 = vcmp.eq.s32.totalorder %v31_v8, %v37_v12 }
  0x84   :  { %v100_v13 = vsel %vm39_vm2, 1.0, %v170_v10 }
  0x85   :  { %102 = vmatmul.msk.f32.vlgmr.msra.gmra.mxu1 %vm48_vm0, %v100_v13 }
  0xfa   :  { %v72_v14 = vpop.f32.mrf.mxu0 }
  0xfb   :  { %78 = vst [vmem:[#allocation5] sm:$0xff] %v72_v14 }
 0x102   :  { %v75_v15 = vpop.f32.mrf.mxu1 }
 0x103   :  { %79 = vst [vmem:[#allocation5 + $0x8] sm:$0xff] %v75_v15 }
 0x104   :  { %92 = dma.vmem_to_hbm [thread:$0]  %s85_s19, 256, %s87_s22, [#allocation4], %s167_s14, %s167_s14, %s168_s15  }
 0x105   :  { %164 = dma.done.wait [#allocation4], 256  }
 0x106   :  { %165 = vsyncadd [#allocation4], 4294967040 }
 0x107   :  { %97 = vsyncpa [#allocation3], 1 }
 0x108   :  { %98 = vsyncpa [#allocation4], 1 }

</bundles_post_ra>
